<compile_context>
chip_gen: v5e
topology: v5e:2x2
jax: 0.10.0
libtpu: 0.0.40
codegen_flags: <defaults>
</compile_context>

<pallas_src>
import functools

import jax
import jax.numpy as jnp
from jax.experimental import pallas as pl
from jax.experimental.pallas import tpu as pltpu


# ----------------------------------------------------------------------- hardware query


def _device_kind():
    try:
        return jax.devices()[0].device_kind.lower()
    except Exception:
        return ""


def _vmem_capacity_bytes():
    try:
        info = pltpu.get_tpu_info()
        cap = getattr(info, "vmem_capacity_bytes", None)
        if cap:
            return int(cap)
    except Exception:
        pass
    kind = _device_kind()
    # v7x: 64 MiB per TensorCore; v5e/v6e: 128 MiB.
    return (64 if "v7" in kind else 128) * 1024 * 1024


_KIND = _device_kind()
_IS_V5 = "v5" in _KIND
_IS_V7 = "v7" in _KIND
_VMEM_CAP = _vmem_capacity_bytes()
# Generation-aware scoped-VMEM limit (leave headroom for compiler internal scratch).
_VMEM_LIMIT = min(int(_VMEM_CAP * 3 // 4), 100 * 1024 * 1024)


# ----------------------------------------------------------------------------- kernels


def _sdpa_exact_kernel(*refs, inv_temperature, bias_value, has_mask):
    """Exact softmax over the full key axis; also writes the attention matrix."""
    if has_mask:
        q_ref, k_ref, v_ref, mask_ref, r_ref, a_ref = refs
    else:
        q_ref, k_ref, v_ref, r_ref, a_ref = refs
        mask_ref = None

    # Scale q in f32 (more accurate than scaling in a narrow dtype), cast back for MXU.
    q = (q_ref[0].astype(jnp.float32) * inv_temperature).astype(q_ref.dtype)
    k = k_ref[0]                            # (HB, Lk, D)
    v = v_ref[0]                            # (HB, Lk, Dv)

    # Scores: contract over D directly (no k.T / XLU transpose), f32 MXU accumulation.
    s = jnp.einsum("hqd,hkd->hqk", q, k, preferred_element_type=jnp.float32)

    if has_mask:
        keep = mask_ref[0] != 0             # (1 or HB, TQ, Lk) — broadcasts over heads
        s = jnp.where(keep, s, jnp.float32(bias_value))

    # Numerically stable softmax over the full key axis, all in f32.
    s_max = jnp.max(s, axis=-1, keepdims=True)
    p = jnp.exp(s - s_max)
    denom = jnp.sum(p, axis=-1, keepdims=True)
    attn = p * pl.reciprocal(denom)         # exact reciprocal: attn is returned

    a_ref[0] = attn.astype(a_ref.dtype)
    # TODO(synk): training-mode dropout on `attn` would go here (identity in eval).
    r_ref[0] = jnp.einsum("hqk,hkd->hqd", attn.astype(v.dtype), v,
                          preferred_element_type=jnp.float32).astype(r_ref.dtype)


def _sdpa_flash_kernel(*refs, inv_temperature, bias_value, has_mask, exp_dtype):
    """Flash-style online softmax over Lk tiles; outputs only r (no attn writeback)."""
    if has_mask:
        q_ref, k_ref, v_ref, mask_ref, r_ref, qs_sc, m_sc, l_sc, acc_sc = refs
    else:
        q_ref, k_ref, v_ref, r_ref, qs_sc, m_sc, l_sc, acc_sc = refs
        mask_ref = None

    ki = pl.program_id(3)

    @pl.when(ki == 0)
    def _():
        # q is resident across the Lk loop: scale it ONCE (in f32) instead of per step.
        qs_sc[...] = (q_ref[0].astype(jnp.float32) * inv_temperature
                      ).astype(qs_sc.dtype)
        m_sc[...] = jnp.full(m_sc.shape, -jnp.inf, dtype=m_sc.dtype)
        l_sc[...] = jnp.zeros(l_sc.shape, dtype=l_sc.dtype)
        acc_sc[...] = jnp.zeros(acc_sc.shape, dtype=acc_sc.dtype)

    q = qs_sc[...]                          # (HB, TQ, D) pre-scaled, MXU dtype
    k = k_ref[0]                            # (HB, TK, D)
    v = v_ref[0]                            # (HB, TK, Dv)

    s = jnp.einsum("hqd,hkd->hqk", q, k, preferred_element_type=jnp.float32)
    if has_mask:
        keep = mask_ref[0] != 0
        s = jnp.where(keep, s, jnp.float32(bias_value))

    m_prev = m_sc[...]
    m_new = jnp.maximum(m_prev, jnp.max(s, axis=-1, keepdims=True))
    alpha = jnp.exp(m_prev - m_new)
    # exp in bf16 on v6e/v7x when the PV matmul is bf16 (2x EUP rate); stats stay f32.
    p = jnp.exp((s - m_new).astype(exp_dtype))
    l_sc[...] = alpha * l_sc[...] + jnp.sum(p.astype(jnp.float32),
                                            axis=-1, keepdims=True)
    acc_sc[...] = alpha * acc_sc[...] + jnp.einsum(
        "hqk,hkd->hqd", p.astype(v.dtype), v, preferred_element_type=jnp.float32)
    m_sc[...] = m_new

    @pl.when(ki == pl.num_programs(3) - 1)
    def _():
        # Exact reciprocal: runs once per q tile over HB*TQ*Dv elements (negligible),
        # and removes the ~1e-2 normalisation error of the approx EUP reciprocal.
        r_ref[0] = (acc_sc[...] * pl.reciprocal(l_sc[...])).astype(r_ref.dtype)


# ----------------------------------------------------------------------------- wrapper


def _auto_block(size, candidates):
    for c in candidates:
        if c <= size and size % c == 0:
            return c
    return size


def _flash_tq_target():
    if _IS_V7:
        return 512
    if _IS_V5:
        return 256
    return 768          # v6e (and default): TQ ~ peak_FLOPs / HBM_BW


def scaled_dot_product_attention(q, k, v, mask=None, *,
                                 temperature=1.0, bias_value=-1e9,
                                 return_attn=True, attn_dtype=None,
                                 mxu_dtype=None, exp_dtype=None,
                                 block_q=None, block_k=None, block_h=None):
    """Pallas TPU scaled dot-product attention.

    q: (B, H, Lq, D), k: (B, H, Lk, D), v: (B, H, Lk, Dv),
    mask broadcastable to (B, H, Lq, Lk) (0 = masked out).
    Returns (r, attn) like the PyTorch module. With return_attn=False the flash
    path is used and attn is None (no O(Lq*Lk) HBM writeback).

    mxu_dtype=jnp.bfloat16 is recommended for f32 inputs (halves K/V HBM bytes and
    runs the MXU at bf16 rate; softmax stats and accumulation stay f32).
    attn_dtype=jnp.bfloat16 is recommended when the attention matrix is returned
    (the exact path is memory-bound on the O(B*H*Lq*Lk) attn writeback).
    Note: bias_value must stay finite (-inf can yield NaN on fully-masked key tiles).
    """
    B, H, Lq, D = q.shape
    Lk = k.shape[2]
    Dv = v.shape[3]

    # Optional narrow-dtype MXU path: cast ONCE in the wrapper (also halves K/V DMA).
    if mxu_dtype is not None and q.dtype != jnp.dtype(mxu_dtype):
        qc, kc, vc = (x.astype(mxu_dtype) for x in (q, k, v))
    else:
        qc, kc, vc = q, k, v
    in_bytes = jnp.dtype(qc.dtype).itemsize

    has_mask = mask is not None
    if has_mask:
        m = jnp.asarray(mask)
        while m.ndim < 4:
            m = m[None]
        head_bcast = (m.shape[1] == 1)
        Hm = 1 if head_bcast else H
        maskf = jnp.broadcast_to(m, (B, Hm, Lq, Lk)).astype(jnp.int8)
    else:
        head_bcast, maskf = True, None

    inv_temperature = 1.0 / float(temperature)
    r_shape = jax.ShapeDtypeStruct((B, H, Lq, Dv), q.dtype)

    def _cparams(sem):
        return pltpu.CompilerParams(dimension_semantics=sem,
                                    vmem_limit_bytes=_VMEM_LIMIT)

    if return_attn:
        # ---- exact path (module semantics: also returns the attention matrix) ----
        a_dtype = q.dtype if attn_dtype is None else attn_dtype
        a_bytes = jnp.dtype(a_dtype).itemsize
        r_bytes = jnp.dtype(q.dtype).itemsize
        budget = int(_VMEM_LIMIT * 0.7)

        def fits(hb, tq):
            kv = 2 * hb * Lk * (D + Dv) * in_bytes            # resident K+V, dbl-buffered
            q_t = 2 * hb * tq * D * in_bytes
            r_t = 2 * hb * tq * Dv * r_bytes
            a_t = 2 * hb * tq * Lk * a_bytes                  # attn writeback tile
            m_t = 2 * hb * tq * Lk if has_mask else 0
            tmp = 3 * hb * tq * Lk * 4                        # f32 s/p temporaries (rough)
            return kv + q_t + r_t + a_t + m_t + tmp <= budget

        hb_cands = [block_h] if block_h is not None else \
            [c for c in (8, 4, 2, 1) if H % c == 0]
        tq_cands = [block_q] if block_q is not None else sorted(
            {c for c in (512, 256, 128, 64, 32, 16, 8)
             if c <= Lq and Lq % c == 0} | {Lq}, reverse=True)

        best = None
        for hb in hb_cands:
            for tq in tq_cands:
                if fits(hb, tq):
                    key = (hb * tq, tq)
                    if best is None or key > best[0]:
                        best = (key, hb, tq)
        HB, TQ = (best[1], best[2]) if best is not None else (hb_cands[-1], tq_cands[-1])
        if H % HB or Lq % TQ:
            raise ValueError("block_h / block_q must divide H / Lq")

        # v7x megacore balance: keep the product of parallel grid extents >= 2.
        if _IS_V7 and block_h is None:
            while HB > 1 and B * (H // HB) * (Lq // TQ) < 2:
                HB = _auto_block(H, tuple(range(HB - 1, 0, -1)))

        MH = 1 if head_bcast else HB
        grid = (B, H // HB, Lq // TQ)
        args = [qc, kc, vc]
        in_specs = [
            pl.BlockSpec((1, HB, TQ, D), lambda b, h, qi: (b, h, qi, 0)),
            pl.BlockSpec((1, HB, Lk, D), lambda b, h, qi: (b, h, 0, 0)),   # resident over qi
            pl.BlockSpec((1, HB, Lk, Dv), lambda b, h, qi: (b, h, 0, 0)),  # resident over qi
        ]
        if has_mask:
            mask_map = (lambda b, h, qi: (b, 0, qi, 0)) if head_bcast \
                else (lambda b, h, qi: (b, h, qi, 0))
            in_specs.append(pl.BlockSpec((1, MH, TQ, Lk), mask_map))
            args.append(maskf)
        out_specs = [
            pl.BlockSpec((1, HB, TQ, Dv), lambda b, h, qi: (b, h, qi, 0)),
            pl.BlockSpec((1, HB, TQ, Lk), lambda b, h, qi: (b, h, qi, 0)),
        ]
        kernel = functools.partial(_sdpa_exact_kernel,
                                   inv_temperature=inv_temperature,
                                   bias_value=bias_value, has_mask=has_mask)
        r, attn = pl.pallas_call(
            kernel,
            out_shape=(r_shape, jax.ShapeDtypeStruct((B, H, Lq, Lk), a_dtype)),
            grid_spec=pltpu.PrefetchScalarGridSpec(
                num_scalar_prefetch=0, grid=grid,
                in_specs=in_specs, out_specs=out_specs),
            compiler_params=_cparams(("parallel", "parallel", "parallel")),
        )(*args)
        return r, attn

    # ---- flash path (no attn output; online softmax over Lk tiles) ----
    # Prefer large TQ (arithmetic intensity scales with TQ only) and small HB.
    if block_q is not None:
        TQ = block_q
    else:
        tq_target = _flash_tq_target()
        cands = tuple(c for c in (768, 640, 512, 384, 256, 128, 64, 32, 16, 8)
                      if c <= tq_target)
        TQ = _auto_block(Lq, cands)
    if Lq % TQ:
        raise ValueError("block_q must divide Lq")

    if block_h is not None:
        HB = block_h
    else:
        if TQ >= 256:
            hb_cands = (2, 1)
        elif TQ >= 128:
            hb_cands = (4, 2, 1)
        else:
            hb_cands = (8, 4, 2, 1)
        HB = _auto_block(H, hb_cands)
    if H % HB:
        raise ValueError("block_h must divide H")

    if _IS_V7 and block_h is None:
        while HB > 1 and B * (H // HB) * (Lq // TQ) < 2:
            HB = _auto_block(H, tuple(range(HB - 1, 0, -1)))

    if block_k is not None:
        TK = block_k
    elif has_mask:
        TK = _auto_block(Lk, (512, 256, 128))      # mask block last dim %128 or full
    else:
        TK = _auto_block(Lk, (512, 256, 128, 64, 32, 16, 8))
    if Lk % TK:
        raise ValueError("block_k must divide Lk")

    if exp_dtype is None:
        # bf16 exp only when the PV matmul is bf16 anyway; f32 on v5e (no bf16 EUP).
        exp_dtype = (jnp.bfloat16
                     if (not _IS_V5) and jnp.dtype(qc.dtype) == jnp.dtype(jnp.bfloat16)
                     else jnp.float32)

    MH = 1 if head_bcast else HB
    grid = (B, H // HB, Lq // TQ, Lk // TK)
    args = [qc, kc, vc]
    in_specs = [
        pl.BlockSpec((1, HB, TQ, D), lambda b, h, qi, ki: (b, h, qi, 0)),  # q resident over ki
        pl.BlockSpec((1, HB, TK, D), lambda b, h, qi, ki: (b, h, ki, 0)),
        pl.BlockSpec((1, HB, TK, Dv), lambda b, h, qi, ki: (b, h, ki, 0)),
    ]
    if has_mask:
        mask_map = (lambda b, h, qi, ki: (b, 0, qi, ki)) if head_bcast \
            else (lambda b, h, qi, ki: (b, h, qi, ki))
        in_specs.append(pl.BlockSpec((1, MH, TQ, TK), mask_map))
        args.append(maskf)
    out_spec = pl.BlockSpec((1, HB, TQ, Dv), lambda b, h, qi, ki: (b, h, qi, 0))

    kernel = functools.partial(_sdpa_flash_kernel,
                               inv_temperature=inv_temperature,
                               bias_value=bias_value, has_mask=has_mask,
                               exp_dtype=exp_dtype)
    r = pl.pallas_call(
        kernel,
        out_shape=r_shape,
        grid_spec=pltpu.PrefetchScalarGridSpec(
            num_scalar_prefetch=0, grid=grid,
            in_specs=in_specs, out_specs=out_spec,
            scratch_shapes=[pltpu.VMEM((HB, TQ, D), qc.dtype),     # pre-scaled q
                            pltpu.VMEM((HB, TQ, 1), jnp.float32),  # m
                            pltpu.VMEM((HB, TQ, 1), jnp.float32),  # l
                            pltpu.VMEM((HB, TQ, Dv), jnp.float32)]),  # acc
        compiler_params=_cparams(("parallel", "parallel", "parallel", "arbitrary")),
    )(*args)
    return r, None


# ----------------------------------------------------------------------------- reference


def _reference(q, k, v, mask, temperature, bias_value):
    attn = jnp.einsum("bhqd,bhkd->bhqk", q / temperature, k)
    if mask is not None:
        attn = jnp.where(mask == 0, bias_value, attn)
    attn = jax.nn.softmax(attn, axis=-1)
    r = jnp.einsum("bhqk,bhkd->bhqd", attn, v)
    return r, attn


if __name__ == "__main__":
    bias_value = -1e9

    # ---- path 1: module-equivalent (returns (r, attn)), exact softmax ----
    B, H, Lq, Lk, D, Dv = 2, 4, 16, 16, 32, 32
    temperature = float(D) ** 0.5
    kq, kk, kv, km = jax.random.split(jax.random.PRNGKey(0), 4)
    q = jax.random.normal(kq, (B, H, Lq, D), dtype=jnp.float32)
    k = jax.random.normal(kk, (B, H, Lk, D), dtype=jnp.float32)
    v = jax.random.normal(kv, (B, H, Lk, Dv), dtype=jnp.float32)
    mask = (jax.random.uniform(km, (B, 1, Lq, Lk)) > 0.2).astype(jnp.int32)
    mask = mask.at[..., 0].set(1)   # ensure no fully-masked row

    r, attn = scaled_dot_product_attention(
        q, k, v, mask, temperature=temperature, bias_value=bias_value)
    jax.block_until_ready((r, attn))
    r_ref, attn_ref = _reference(q, k, v, mask, temperature, bias_value)
    assert jnp.allclose(r, r_ref, atol=1e-4, rtol=1e-4), "r mismatch (exact path)"
    assert jnp.allclose(attn, attn_ref, atol=1e-4, rtol=1e-4), "attn mismatch (exact path)"

    # mask=None: the mask input is compiled out entirely (no all-ones tensor).
    r_nm, attn_nm = scaled_dot_product_attention(
        q, k, v, None, temperature=temperature, bias_value=bias_value)
    jax.block_until_ready((r_nm, attn_nm))
    r_nm_ref, attn_nm_ref = _reference(q, k, v, None, temperature, bias_value)
    assert jnp.allclose(r_nm, r_nm_ref, atol=1e-4, rtol=1e-4), "r mismatch (no-mask path)"
    assert jnp.allclose(attn_nm, attn_nm_ref, atol=1e-4, rtol=1e-4), "attn mismatch (no-mask)"

    # ---- path 2: flash-style (return_attn=False), online softmax over Lk tiles ----
    B2, H2, Lq2, Lk2, D2, Dv2 = 2, 4, 16, 256, 32, 32
    temperature2 = float(D2) ** 0.5
    kq2, kk2, kv2, km2 = jax.random.split(jax.random.PRNGKey(1), 4)
    q2 = jax.random.normal(kq2, (B2, H2, Lq2, D2), dtype=jnp.float32)
    k2 = jax.random.normal(kk2, (B2, H2, Lk2, D2), dtype=jnp.float32)
    v2 = jax.random.normal(kv2, (B2, H2, Lk2, Dv2), dtype=jnp.float32)
    mask2 = (jax.random.uniform(km2, (B2, 1, Lq2, Lk2)) > 0.2).astype(jnp.int32)
    mask2 = mask2.at[..., 0].set(1)
    r2_ref, _ = _reference(q2, k2, v2, mask2, temperature2, bias_value)

    # (a) native f32 MXU + exact reciprocal finalize -> tight tolerance.
    r2a, attn2a = scaled_dot_product_attention(
        q2, k2, v2, mask2, temperature=temperature2, bias_value=bias_value,
        return_attn=False, block_q=8, block_k=128)
    jax.block_until_ready(r2a)
    assert attn2a is None
    assert jnp.allclose(r2a, r2_ref, atol=1e-4, rtol=1e-4), "r mismatch (flash f32 path)"

    # (b) bf16 MXU path (recommended for f32 inputs): f32 accumulation/stats,
    #     bf16 exp on v6e/v7x -> looser tolerance from the bf16 rounding.
    r2b, attn2b = scaled_dot_product_attention(
        q2, k2, v2, mask2, temperature=temperature2, bias_value=bias_value,
        return_attn=False, mxu_dtype=jnp.bfloat16, block_q=8, block_k=128)
    jax.block_until_ready(r2b)
    assert attn2b is None
    assert jnp.allclose(r2b, r2_ref, atol=2e-2, rtol=2e-2), "r mismatch (flash bf16 path)"

    print("KERNEL_OK")
</pallas_src>

<mosaic_0001>
module attributes {stable_mosaic.version = 11 : i64} {
  func.func @_sdpa_exact_kernel(%arg0: i32, %arg1: i32, %arg2: i32, %arg3: memref<1x4x16x32xf32, #tpu.memory_space<vmem>>, %arg4: memref<1x4x16x32xf32, #tpu.memory_space<vmem>>, %arg5: memref<1x4x16x32xf32, #tpu.memory_space<vmem>>, %arg6: memref<1x1x16x16xi8, #tpu.memory_space<vmem>>, %arg7: memref<1x4x16x32xf32, #tpu.memory_space<vmem>>, %arg8: memref<1x4x16x16xf32, #tpu.memory_space<vmem>>) attributes {dimension_semantics = [#tpu.dimension_semantics<parallel>, #tpu.dimension_semantics<parallel>, #tpu.dimension_semantics<parallel>], iteration_bounds = array<i64: 2, 1, 1>, scalar_prefetch = 0 : i64, scratch_operands = 0 : i64, tpu.core_type = #tpu.core_type<tc>, window_params = [{transform_indices = @transform_0, window_bounds = array<i64: 1, 4, 16, 32>}, {transform_indices = @transform_1, window_bounds = array<i64: 1, 4, 16, 32>}, {transform_indices = @transform_2, window_bounds = array<i64: 1, 4, 16, 32>}, {transform_indices = @transform_3, window_bounds = array<i64: 1, 1, 16, 16>}, {transform_indices = @transform_4, window_bounds = array<i64: 1, 4, 16, 32>}, {transform_indices = @transform_5, window_bounds = array<i64: 1, 4, 16, 16>}]} {
    %c0 = arith.constant 0 : index
    %c0_0 = arith.constant 0 : index
    %c0_1 = arith.constant 0 : index
    %c0_2 = arith.constant 0 : index
    %0 = vector.load %arg3[%c0, %c0_0, %c0_1, %c0_2] : memref<1x4x16x32xf32, #tpu.memory_space<vmem>>, vector<1x4x16x32xf32>
    %1 = vector.shape_cast %0 : vector<1x4x16x32xf32> to vector<4x16x32xf32>
    %cst = arith.constant 0.176776692 : f32
    %2 = vector.broadcast %cst : f32 to vector<4x16x32xf32>
    %3 = arith.mulf %1, %2 : vector<4x16x32xf32>
    %c0_3 = arith.constant 0 : index
    %c0_4 = arith.constant 0 : index
    %c0_5 = arith.constant 0 : index
    %c0_6 = arith.constant 0 : index
    %4 = vector.load %arg4[%c0_3, %c0_4, %c0_5, %c0_6] : memref<1x4x16x32xf32, #tpu.memory_space<vmem>>, vector<1x4x16x32xf32>
    %5 = vector.shape_cast %4 : vector<1x4x16x32xf32> to vector<4x16x32xf32>
    %c0_7 = arith.constant 0 : index
    %c0_8 = arith.constant 0 : index
    %c0_9 = arith.constant 0 : index
    %c0_10 = arith.constant 0 : index
    %6 = vector.load %arg5[%c0_7, %c0_8, %c0_9, %c0_10] : memref<1x4x16x32xf32, #tpu.memory_space<vmem>>, vector<1x4x16x32xf32>
    %7 = vector.shape_cast %6 : vector<1x4x16x32xf32> to vector<4x16x32xf32>
    "tpu.trace_start"() <{level = 10 : i32, message = "hqd,hkd->hqk"}> : () -> ()
    %cst_11 = arith.constant dense<0.000000e+00> : vector<4x16x16xf32>
    %8 = tpu.matmul %3, %5, %cst_11 {dimension_numbers = #tpu.dot_dimension_numbers<[2], [2], [1], [1], [0, 0, 0, 1, 1, 1], [0], [0]>} : vector<4x16x32xf32>, vector<4x16x32xf32>, vector<4x16x16xf32> -> vector<4x16x16xf32>
    "tpu.trace_stop"() : () -> ()
    %c0_12 = arith.constant 0 : index
    %c0_13 = arith.constant 0 : index
    %c0_14 = arith.constant 0 : index
    %c0_15 = arith.constant 0 : index
    %9 = vector.load %arg6[%c0_12, %c0_13, %c0_14, %c0_15] : memref<1x1x16x16xi8, #tpu.memory_space<vmem>>, vector<1x1x16x16xi8>
    %10 = vector.shape_cast %9 : vector<1x1x16x16xi8> to vector<1x16x16xi8>
    %c0_i8 = arith.constant 0 : i8
    %11 = vector.broadcast %c0_i8 : i8 to vector<1x16x16xi8>
    %12 = arith.cmpi ne, %10, %11 : vector<1x16x16xi8>
    %cst_16 = arith.constant -1.000000e+09 : f32
    %13 = vector.shape_cast %12 : vector<1x16x16xi1> to vector<1x16x16xi1>
    %14 = vector.broadcast %13 : vector<1x16x16xi1> to vector<4x16x16xi1>
    %15 = vector.broadcast %cst_16 : f32 to vector<4x16x16xf32>
    %16 = arith.select %14, %8, %15 : vector<4x16x16xi1>, vector<4x16x16xf32>
    %cst_17 = arith.constant dense<0xFF800000> : vector<4x16xf32>
    %17 = vector.multi_reduction <maximumf>, %16, %cst_17 [2] : vector<4x16x16xf32> to vector<4x16xf32>
    %18 = vector.shape_cast %17 : vector<4x16xf32> to vector<4x16x1xf32>
    %19 = vector.broadcast %18 : vector<4x16x1xf32> to vector<4x16x16xf32>
    %20 = arith.subf %16, %19 : vector<4x16x16xf32>
    %21 = math.exp %20 : vector<4x16x16xf32>
    %cst_18 = arith.constant dense<0.000000e+00> : vector<4x16xf32>
    %22 = vector.multi_reduction <add>, %21, %cst_18 [2] : vector<4x16x16xf32> to vector<4x16xf32>
    %23 = vector.shape_cast %22 : vector<4x16xf32> to vector<4x16x1xf32>
    %24 = tpu.reciprocal %23 : vector<4x16x1xf32> -> vector<4x16x1xf32>
    %25 = vector.broadcast %24 : vector<4x16x1xf32> to vector<4x16x16xf32>
    %26 = arith.mulf %21, %25 : vector<4x16x16xf32>
    %c0_19 = arith.constant 0 : index
    %c0_20 = arith.constant 0 : index
    %c0_21 = arith.constant 0 : index
    %c0_22 = arith.constant 0 : index
    %27 = vector.load %arg8[%c0_19, %c0_20, %c0_21, %c0_22] : memref<1x4x16x16xf32, #tpu.memory_space<vmem>>, vector<1x4x16x16xf32>
    %28 = vector.shape_cast %27 : vector<1x4x16x16xf32> to vector<4x16x16xf32>
    %29 = vector.shape_cast %26 : vector<4x16x16xf32> to vector<1x4x16x16xf32>
    tpu.vector_store %arg8[%c0_19, %c0_20, %c0_21, %c0_22], %29 {strides = array<i32>} : memref<1x4x16x16xf32, #tpu.memory_space<vmem>>, vector<1x4x16x16xf32>,
    "tpu.trace_start"() <{level = 10 : i32, message = "hqk,hkd->hqd"}> : () -> ()
    %cst_23 = arith.constant dense<0.000000e+00> : vector<4x16x32xf32>
    %30 = tpu.matmul %26, %7, %cst_23 {dimension_numbers = #tpu.dot_dimension_numbers<[2], [1], [1], [2], [0, 0, 0, 1, 1, 2], [0], [0]>} : vector<4x16x16xf32>, vector<4x16x32xf32>, vector<4x16x32xf32> -> vector<4x16x32xf32>
    "tpu.trace_stop"() : () -> ()
    %c0_24 = arith.constant 0 : index
    %c0_25 = arith.constant 0 : index
    %c0_26 = arith.constant 0 : index
    %c0_27 = arith.constant 0 : index
    %31 = vector.load %arg7[%c0_24, %c0_25, %c0_26, %c0_27] : memref<1x4x16x32xf32, #tpu.memory_space<vmem>>, vector<1x4x16x32xf32>
    %32 = vector.shape_cast %31 : vector<1x4x16x32xf32> to vector<4x16x32xf32>
    %33 = vector.shape_cast %30 : vector<4x16x32xf32> to vector<1x4x16x32xf32>
    tpu.vector_store %arg7[%c0_24, %c0_25, %c0_26, %c0_27], %33 {strides = array<i32>} : memref<1x4x16x32xf32, #tpu.memory_space<vmem>>, vector<1x4x16x32xf32>,
    return
  }
  func.func @transform_0(%arg0: i32, %arg1: i32, %arg2: i32) -> (i32, i32, i32, i32) {
    %c0_i32 = arith.constant 0 : i32
    %c0_i32_0 = arith.constant 0 : i32
    return %arg0, %arg1, %arg2, %c0_i32 : i32, i32, i32, i32
  }
  func.func @transform_1(%arg0: i32, %arg1: i32, %arg2: i32) -> (i32, i32, i32, i32) {
    %c0_i32 = arith.constant 0 : i32
    %c0_i32_0 = arith.constant 0 : i32
    %c0_i32_1 = arith.constant 0 : i32
    return %arg0, %arg1, %c0_i32, %c0_i32_0 : i32, i32, i32, i32
  }
  func.func @transform_2(%arg0: i32, %arg1: i32, %arg2: i32) -> (i32, i32, i32, i32) {
    %c0_i32 = arith.constant 0 : i32
    %c0_i32_0 = arith.constant 0 : i32
    %c0_i32_1 = arith.constant 0 : i32
    return %arg0, %arg1, %c0_i32, %c0_i32_0 : i32, i32, i32, i32
  }
  func.func @transform_3(%arg0: i32, %arg1: i32, %arg2: i32) -> (i32, i32, i32, i32) {
    %c0_i32 = arith.constant 0 : i32
    %c0_i32_0 = arith.constant 0 : i32
    %c0_i32_1 = arith.constant 0 : i32
    return %arg0, %c0_i32, %arg2, %c0_i32_0 : i32, i32, i32, i32
  }
  func.func @transform_4(%arg0: i32, %arg1: i32, %arg2: i32) -> (i32, i32, i32, i32) {
    %c0_i32 = arith.constant 0 : i32
    %c0_i32_0 = arith.constant 0 : i32
    return %arg0, %arg1, %arg2, %c0_i32 : i32, i32, i32, i32
  }
  func.func @transform_5(%arg0: i32, %arg1: i32, %arg2: i32) -> (i32, i32, i32, i32) {
    %c0_i32 = arith.constant 0 : i32
    %c0_i32_0 = arith.constant 0 : i32
    return %arg0, %arg1, %arg2, %c0_i32 : i32, i32, i32, i32
  }
}

</mosaic_0001>

<bundles_post_ra>
// kernel: tpu_custom_call.1
= control target key start
LH: loop header
LB: loop body
LE: loop exit
PB: predicated region body
PF: predicated region fallthrough
CT: control target
= control target key end

     0   :  { %s2106_s0 = inlined_call_operand.hbm [shape: f32[2,4,16,32], index: 0, kind: input, shape index: {}]   ;;  %s2107_s1 = inlined_call_operand.hbm [shape: f32[2,4,16,32], index: 1, kind: input, shape index: {}]   ;;  %s2108_s2 = inlined_call_operand.hbm [shape: f32[2,4,16,32], index: 2, kind: input, shape index: {}]   ;;  %s2109_s3 = inlined_call_operand.hbm [shape: s8[2,1,16,16], index: 3, kind: input, shape index: {}]   ;;  %s2110_s4 = inlined_call_operand.hbm [shape: f32[2,4,16,32], index: 4, kind: output, shape index: {0}]   ;;  %s2111_s5 = inlined_call_operand.hbm [shape: f32[2,4,16,16], index: 5, kind: output, shape index: {1}]  }
   0x1   :  { %2119 = sst [smem:[#allocation24_spill]] %s2106_s0 }
   0x2   :  { %2120 = sst [smem:[#allocation25_spill]] %s2107_s1 }
   0x3   :  { %2121 = sst [smem:[#allocation26_spill]] %s2110_s4 }
   0x4   :  { %11 = vsyncpa [#allocation3], 0 }
   0x5   :  { %13 = vsyncpa [#allocation3 + $0x1], 0 }
   0x6   :  { %14 = vsyncpa [#allocation6], 0 }
   0x7   :  { %16 = vsyncpa [#allocation6 + $0x1], 0 }
   0x8   :  { %17 = vsyncpa [#allocation9], 0 }
   0x9   :  { %19 = vsyncpa [#allocation9 + $0x1], 0 }
   0xa   :  { %20 = vsyncpa [#allocation4], 0 }
   0xb   :  { %22 = vsyncpa [#allocation4 + $0x1], 0 }
   0xc   :  { %23 = vsyncpa [#allocation12], 0 }
   0xd   :  { %25 = vsyncpa [#allocation12 + $0x1], 0  ;;  %s1678_s18 = smov 0   ;;  %s1680_s19 = smov 0  }
   0xe   :  { %s1682_s20 = smov 0   ;;  %s1684_s21 = smov 0  }
   0xf   :  { %s1686_s22 = smov 0   ;;  %s1688_s23 = smov 0  }
  0x10 LB: > { %2122 = sst [smem:[#allocation18_spill]] %s1619_s18  ;;  %s1709_s24 = sadd.s32 4294967295, %s1639_s23   ;;  %s1639_s23 = sphi %s1688_s23, %s31_s23   ;;  %s1635_s22 = sphi %s1686_s22, %s2160_s22   ;;  %s1631_s21 = sphi %s1684_s21, %s2159_s21   ;;  %s1627_s20 = sphi %s1682_s20, %s2155_s20   ;;  %s1623_s19 = sphi %s1680_s19, %s2158_s19   ;;  %s1619_s18 = sphi %s1678_s18, %s2157_s18  }
  0x11   : > { %2123 = sst [smem:[#allocation19_spill]] %s1627_s20  ;;  %s1216_s25 = sadd.s32 4294967294, %s1639_s23  }
  0x12   : > { %2124 = sst [smem:[#allocation20_spill]] %s1639_s23  ;;  %s50_s26 = sadd.s32 1, %s1635_s22 }
  0x13   : > { %s61_s27 = sadd.s32 1, %s1627_s20  ;;  %p52_p0 = scmp.ge.s32.totalorder %s50_s26, 2 }
  0x14   : > { %p68_p1 = scmp.ne.s32.totalorder %s1627_s20, %s1623_s19  ;;  %p69_p2 = scmp.eq.s32.totalorder %s1639_s23, 0 }
  0x15   : > { %p74_p3 = scmp.ne.s32.totalorder %s1623_s19, %s1619_s18  ;;  %s2162_s26 = smov (%p52_p0, %s50_s26), 0 }
  0x16   : > { %2125 = sst [smem:[#allocation21_spill]] %s2162_s26  ;;  %p1721_p4 = por %p69_p2, %p68_p1 }
  0x17   : > { %p75_p5 = scmp.eq.s32.totalorder %s1709_s24, 0  ;;  %s54_s29 = ssub.s32 %s1635_s22, %s2162_s26 }
  0x18   : > { %p186_p6 = scmp.eq.s32.totalorder %s1709_s24, 1  ;;  %p59_p7 = scmp.eq.s32.totalorder %s54_s29, 0 }
  0x19   : > { %p1729_p8 = por %p75_p5, %p74_p3  ;;  %p192_p10 = scmp.eq.s32.totalorder %s1216_s25, 1 }
  0x1a   : > { %p1733_p9 = por %p186_p6, %p68_p1  ;;  %p1218_p12 = scmp.ge.s32.totalorder %s1639_s23, 2 }
  0x1b   : > { %s1738_s7 = scalar_select %p59_p7, %s1627_s20, %s61_s27  }
  0x1c   : > { %p1740_p11 = por %p192_p10, %p74_p3  ;;  %p1308_p13 = scmp.lt.s32.totalorder %s1639_s23, 2 }
  0x1d   : > { %2129 = sst [smem:[#allocation22_spill]] %s1738_s7  ;;  %s1747_s9 = sand.u32 1, %s1627_s20  }
  0x1e   : > { %s2130_s8 = scalar_select %p1740_p11, 1, 0 }
  0x1f   : > { %s1750_s10 = sshll.u32 %s1747_s9, 6  ;;  %s1270_s11 = sshll.u32 %s1635_s22, 6 }
  0x20   : > { %2131 = sst [smem:[#allocation23_spill]] %s2130_s8  ;;  %p1755_p0 = pnand %p1308_p13, %p1721_p4 }
  0x21   : > { %s269_s13 = sand.u32 1, %s1639_s23   ;;  %s2133_s1 = sld [smem:[#allocation25_spill]] }
  0x22   : > { %s273_s25 = scalar_lea.vmem [#allocation5], %s1750_s10  ;;  %s270_s29 = scalar_lea.sflag [#allocation6], %s269_s13 }
  0x23   : > { %s284_s27 = sshll.u32 %s273_s25, 4  ;;  %s1641_s28 = smov 128   ;;  %s285_s27 = int_to_ptr.vmem [resolvable:$true] %s284_s27 }
  0x24   : > { %s1642_s26 = smov 8   ;;  %p1231_p1 = scmp.ge.s32.totalorder %s1639_s23, 1 }
  0x25   : > { %p341_p2 = scmp.lt.s32.totalorder %s1639_s23, 3  ;;  %s2135_s0 = sld [smem:[#allocation24_spill]] }
  0x26   : > { %s246_s13 = scalar_lea.vmem [#allocation2], %s1750_s10  ;;  %s243_s20 = scalar_lea.sflag [#allocation3], %s1747_s9 }
  0x27   : > { %s281_s16 = scalar_lea.hbm %s2133_s1, %s1270_s11  ;;  %p1768_p3 = pnand %p1231_p1, %p341_p2 }
  0x28   : > { %s282_s17 = sshll.u32 %s281_s16, 4  ;;  %s259_s7 = sshll.u32 %s246_s13, 4  ;;  %s283_s17 = int_to_ptr.hbm [resolvable:$true] %s282_s17  ;;  %s260_s7 = int_to_ptr.vmem [resolvable:$true] %s259_s7 }
  0x29   : > { %1294 = dma.hbm_to_vmem [thread:$0]  (!%p1755_p0), %s283_s17, 1024, %s285_s27, %s270_s29, %s1641_s28, %s1641_s28, %s1642_s26  }
  0x2a   : > { %s306_s23 = scalar_lea.hbm %s2108_s2, %s1270_s11  ;;  %s298_s18 = scalar_lea.vmem [#allocation7], %s1750_s10 }
  0x2b   : > { %s256_s25 = scalar_lea.hbm %s2135_s0, %s1270_s11  ;;  %s307_s8 = sshll.u32 %s306_s23, 4  ;;  %s308_s8 = int_to_ptr.hbm [resolvable:$true] %s307_s8 }
  0x2c   : > { %s257_s1 = sshll.u32 %s256_s25, 4  ;;  %s309_s15 = sshll.u32 %s298_s18, 4  ;;  %s258_s1 = int_to_ptr.hbm [resolvable:$true] %s257_s1  ;;  %s310_s15 = int_to_ptr.vmem [resolvable:$true] %s309_s15 }
  0x2d   : > { %1291 = dma.hbm_to_vmem [thread:$0]  (!%p1755_p0), %s258_s1, 1024, %s260_s7, %s243_s20, %s1641_s28, %s1641_s28, %s1642_s26  }
  0x2e   : > { %1297 = dma.hbm_to_vmem [thread:$0]  (!%p1755_p0), %s308_s8, 1024, %s310_s15, %s270_s29, %s1641_s28, %s1641_s28, %s1642_s26  }
  0x2f   : > { %s1228_s16 = sshll.u32 %s1747_s9, 2  ;;  %s1273_s25 = sshll.u32 %s1635_s22, 2 }
  0x30   : > { %s330_s4 = scalar_lea.hbm %s2109_s3, %s1273_s25  ;;  %s323_s1 = scalar_lea.vmem [#allocation8], %s1228_s16 }
  0x31   : > { %s333_s20 = sshll.u32 %s323_s1, 4  ;;  %s331_s7 = sshll.u32 %s330_s4, 4  ;;  %s334_s20 = int_to_ptr.vmem [resolvable:$true] %s333_s20  ;;  %s332_s7 = int_to_ptr.hbm [resolvable:$true] %s331_s7 }
  0x32   : > { %s320_s11 = scalar_lea.sflag [#allocation9], %s1747_s9  ;;  %s1643_s23 = smov 32  }
  0x33   : > { %s1644_s10 = smov 2   ;;  %345 = sbr.rel (%p1768_p3) target bundleno = 624 (0x270), region = 36 }
  0x34   : > { %1300 = dma.hbm_to_vmem [thread:$0]  (!%p1755_p0), %s332_s7, 64, %s334_s20, %s320_s11, %s1643_s23, %s1643_s23, %s1644_s10  }
  0x35   : > { %s1796_s18 = sand.u32 (!%p1768_p3), 1, %s1623_s19  }
  0x36   : > { %s1799_s0 = sshll.u32 (!%p1768_p3), %s1796_s18, 6  ;;  %s348_s4 = scalar_lea.sflag (!%p1768_p3), [#allocation3], %s1796_s18 }
  0x37   : > { %s1803_s26 = scalar_lea.vmem (!%p1768_p3), [#allocation2], %s1799_s0 }
  0x38   : > { %1598 = dma.done.wait (%p1729_p8), %s348_s4, 1024  }
  0x39   : > { %1600 = vsyncadd (%p1729_p8), %s348_s4, 4294966272  ;;  %s357_s8 = sand.u32 1, %s1709_s24   ;;  %s361_s12 = scalar_lea.vmem [#allocation5], %s1799_s0 }
  0x3a   : > { %s358_s9 = scalar_lea.sflag [#allocation6], %s357_s8 }
  0x3b   : > { %1602 = dma.done.wait (%p1729_p8), %s358_s9, 2048  }
  0x3c   : > { %1604 = vsyncadd (%p1729_p8), %s358_s9, 4294965248  ;;  %s1235_s29 = sshll.u32 %s1796_s18, 2  ;;  %s1817_s28 = scalar_lea.vmem [#allocation7], %s1799_s0 }
  0x3d   : > { %s378_s14 = scalar_lea.sflag [#allocation9], %s1796_s18  ;;  %s1820_s17 = scalar_lea.vmem [#allocation8], %s1235_s29 }
  0x3e   : > { %1606 = dma.done.wait (%p1729_p8), %s378_s14, 64  }
  0x3f   : > { %1608 = vsyncadd (%p1729_p8), %s378_s14, 4294967232  ;;  %vm472_vm0 = vcmask 261120   ;;  %v457_v0 = vld [vmem:[%s361_s12 + $0x8] sm:$0xff]  ;;  %v456_v2 = vld [vmem:[%s361_s12] sm:$0xff]  ;;  %v1645_v25 = vmov 0   ;;  %vm635_vm3 = vcmask 130048  }
  0x40   : > { %v461_v1 = vld [vmem:[%s361_s12 + $0x28] sm:$0xff]  ;;  %1238 = vmatpush.xpose.msk.msra.mxu0 %vm472_vm0, %v457_v0  ;;  %v440_v3 = vld [vmem:[%s1803_s26] sm:$0xff]  ;;  %v459_v6 = vld [vmem:[%s361_s12 + $0x18] sm:$0xff]  ;;  %s1917_s24 = scalar_lea.vmem [#allocation11], %s1799_s0  ;;  %s1274_s30 = sshll.u32 %s1631_s21, 6 }
  0x41   : > { %1246 = vmatpush.xpose.msk.msra.mxu2 %vm472_vm0, %v461_v1  ;;  %v444_v4 = vld [vmem:[%s1803_s26 + $0x20] sm:$0xff]  ;;  %v463_v7 = vld [vmem:[%s361_s12 + $0x38] sm:$0xff]  ;;  %v448_v8 = vmul.f32 0.17677669, %v440_v3  ;;  %1242 = vmatpush.xpose.msk.msra.mxu1 %vm472_vm0, %v459_v6  ;;  %v442_v9 = vld [vmem:[%s1803_s26 + $0x10] sm:$0xff]  ;;  %s1004_s16 = scalar_lea.hbm %s2111_s5, %s1274_s30  ;;  %s1005_s25 = sshll.u32 %s1917_s24, 4  ;;  %s1006_s25 = int_to_ptr.vmem [resolvable:$true] %s1005_s25 }
  0x42   : > { %v460_v5 = vld [vmem:[%s361_s12 + $0x20] sm:$0xff]  ;;  %1250 = vmatpush.xpose.msk.msra.mxu3 %vm472_vm0, %v463_v7  ;;  %v452_v10 = vmul.f32 0.17677669, %v444_v4  ;;  %v458_v11 = vld [vmem:[%s361_s12 + $0x10] sm:$0xff]  ;;  %v450_v14 = vmul.f32 0.17677669, %v442_v9 }
  0x43   : > { %v462_v12 = vld [vmem:[%s361_s12 + $0x30] sm:$0xff]  ;;  %v445_v16 = vld [vmem:[%s1803_s26 + $0x28] sm:$0xff]  ;;  %v443_v18 = vld [vmem:[%s1803_s26 + $0x18] sm:$0xff]  ;;  %s1007_s13 = sshll.u32 %s1004_s16, 4  ;;  %s966_s1 = scalar_lea.sflag [#allocation12], %s1796_s18  ;;  %s1008_s13 = int_to_ptr.hbm [resolvable:$true] %s1007_s13 }
  0x44   : > { %v446_v13 = vld [vmem:[%s1803_s26 + $0x30] sm:$0xff]  ;;  %1239 = vmatpush.xpose.msk.msra.mxu0 %vm472_vm0, %v456_v2  ;;  %v441_v17 = vld [vmem:[%s1803_s26 + $0x8] sm:$0xff]  ;;  %v447_v19 = vld [vmem:[%s1803_s26 + $0x38] sm:$0xff]  ;;  %v453_v20 = vmul.f32 0.17677669, %v445_v16  ;;  %s1531_s20 = sshra.s32 %s1008_s13, 4  ;;  %s1532_s20 = int_to_ptr.hbm [resolvable:$true] %s1531_s20 }
  0x45   : > { %1247 = vmatpush.xpose.msk.msra.mxu2 %vm472_vm0, %v460_v5  ;;  %v454_v15 = vmul.f32 0.17677669, %v446_v13  ;;  %1243 = vmatpush.xpose.msk.msra.mxu1 %vm472_vm0, %v458_v11  ;;  %v449_v21 = vmul.f32 0.17677669, %v441_v17  ;;  %v451_v22 = vmul.f32 0.17677669, %v443_v18  ;;  %p1538_p7 = scmp.lt.s32.totalorder %s1532_s20, %s2111_s5 }
  0x46   : > { %1251 = vmatpush.xpose.msk.msra.mxu3 %vm472_vm0, %v462_v12  ;;  %v455_v23 = vmul.f32 0.17677669, %v447_v19  ;;  %v613_v24 = vld [vmem:[%s1820_s17] sm:$0x3]  ;;  %v614_v29 = vld [vmem:[%s1820_s17 + $0x2] sm:$0x3] }
  0x47   : > { %1240 = vmatmul.msk.f32.vlgmr.msra.gmra.mxu0 %vm472_vm0, %v448_v8  ;;  %vm615_vm1 = vnez %v613_v24  ;;  %vm616_vm4 = vnez %v614_v29  ;;  %s1533_s7 = scalar_lea.hbm %s1532_s20, 64  ;;  %s1537_s10 = scalar_lea.hbm %s2111_s5, 128 }
  0x48   : > { %1248 = vmatmul.msk.f32.vlgmr.msra.gmra.mxu2 %vm472_vm0, %v452_v10  ;;  %1244 = vmatmul.msk.f32.vlgmr.msra.gmra.mxu1 %vm472_vm0, %v450_v14  ;;  %v617_v26 = vsel %vm615_vm1, 16843009, %v1645_v25  ;;  %v618_v35 = vsel %vm616_vm4, 16843009, %v1645_v25  ;;  %p1534_p4 = scmp.ne.s32.totalorder %s1532_s20, %s1533_s7  ;;  %p1539_p8 = scmp.lt.s32.totalorder %s1537_s10, %s1533_s7 }
  0x49   : > { %1252 = vmatmul.msk.f32.vlgmr.msra.gmra.mxu3 %vm472_vm0, %v454_v15  ;;  %v619_v27 = vunpack.c.0.s8 %v617_v26  ;;  %v620_v40 = vunpack.c.0.s8 %v618_v35  ;;  %v471_v35 = vld [vmem:[%s1817_s28 + $0x38] sm:$0xff] }
  0x4a   : > { %943 = vmatpush.msrb.mxu3 %v471_v35  ;;  %p1535_p5 = pnand %p1534_p4, %p1733_p9  ;;  %p1540_p10 = por %p1539_p8, %p1538_p7 }
  0x4b   : > { %vm1851_vm2 = vcmp.ne.s32.totalorder %v619_v27, 0  ;;  %vm622_vm5 = vcmp.ne.s32.totalorder %v620_v40, 0  ;;  %v466_v40 = vld [vmem:[%s1817_s28 + $0x10] sm:$0xff] }
  0x4c   : > { %p1536_p6 = pneg %p1535_p5 }
  0x4e   : > { %p1541_p13 = pnand %p1540_p10, %p1536_p6 }
  0x4f   : > { %1241 = vmatmul.msk.f32.gmra.mxu0 %vm472_vm0, %v449_v21 }
  0x50   : > { %1249 = vmatmul.msk.f32.gmra.mxu2 %vm472_vm0, %v453_v20  ;;  %1245 = vmatmul.msk.f32.gmra.mxu1 %vm472_vm0, %v451_v22 }
  0x51   : > { %1253 = vmatmul.msk.f32.gmra.mxu3 %vm472_vm0, %v455_v23 }
  0xc4   : > { %v502_v30 = vpop.f32.mrf.mxu0 }
  0xc5   : > { %v627_v31 = vsel %vm1851_vm2, %v502_v30, -1e+09  ;;  %v537_v33 = vpop.f32.mrf.mxu1 }
  0xc6   : > { %v636_v32 = vsel %vm635_vm3, %v627_v31, -inf  ;;  %v629_v34 = vsel %vm1851_vm2, %v537_v33, -1e+09  ;;  %v464_v33 = vld [vmem:[%s1817_s28] sm:$0xff] }
  0xc7   : > { %637 = vmax.xlane.f32.xlu1 %v636_v32  ;;  %v642_v39 = vsel %vm635_vm3, %v629_v34, -inf  ;;  %v465_v32 = vld [vmem:[%s1817_s28 + $0x8] sm:$0xff] }
  0xc8   : > { %856 = vmatpush.msrb.mxu0 %v465_v32 }
  0xca   : > { %857 = vmatpush.msrb.mxu0 %v464_v33 }
  0xcb   : > { %v572_v36 = vpop.f32.mrf.mxu2 }
  0xcc   : > { %v631_v37 = vsel %vm1851_vm2, %v572_v36, -1e+09  ;;  %v607_v41 = vpop.f32.mrf.mxu3  ;;  %v505_v50 = vpop.f32.mrf.mxu0  ;;  %v468_v36 = vld [vmem:[%s1817_s28 + $0x20] sm:$0xff] }
  0xcd   : > { %v648_v38 = vsel %vm635_vm3, %v631_v37, -inf  ;;  %v540_v42 = vpop.f32.mrf.mxu1  ;;  %v633_v43 = vsel %vm1851_vm2, %v607_v41, -1e+09  ;;  %v628_v52 = vsel %vm622_vm5, %v505_v50, -1e+09 }
  0xce   : > { %649 = vmax.xlane.f32.xlu0 %v648_v38  ;;  %v630_v44 = vsel %vm622_vm5, %v540_v42, -1e+09  ;;  %v654_v46 = vsel %vm635_vm3, %v633_v43, -inf  ;;  %v639_v55 = vsel %vm635_vm3, %v628_v52, -inf  ;;  %v467_v38 = vld [vmem:[%s1817_s28 + $0x18] sm:$0xff] }
  0xcf   : > { %643 = vmax.xlane.f32.xlu1 %v642_v39  ;;  %v645_v49 = vsel %vm635_vm3, %v630_v44, -inf  ;;  %885 = vmatpush.msrb.mxu1 %v467_v38  ;;  %v470_v39 = vld [vmem:[%s1817_s28 + $0x30] sm:$0xff] }
  0xd0   : > { %944 = vmatpush.msrb.mxu3 %v470_v39 }
  0xd1   : > { %886 = vmatpush.msrb.mxu1 %v466_v40 }
  0xd3   : > { %v575_v45 = vpop.f32.mrf.mxu2 }
  0xd4   : > { %v632_v47 = vsel %vm622_vm5, %v575_v45, -1e+09  ;;  %v610_v51 = vpop.f32.mrf.mxu3 }
  0xd5   : > { %v651_v48 = vsel %vm635_vm3, %v632_v47, -inf  ;;  %v634_v53 = vsel %vm622_vm5, %v610_v51, -1e+09 }
  0xd6   : > { %655 = vmax.xlane.f32.xlu0 %v654_v46  ;;  %652 = vmax.xlane.f32.xlu2 %v651_v48  ;;  %v657_v54 = vsel %vm635_vm3, %v634_v53, -inf }
  0xd7   : > { %646 = vmax.xlane.f32.xlu1 %v645_v49 }
  0xde   : > { %658 = vmax.xlane.f32.xlu2 %v657_v54  ;;  %640 = vmax.xlane.f32.xlu0 %v639_v55 }
 0x13a   : > { %v638_v56 = vpop.xlane.xlu1 %637 }
 0x13b   : > { %v660_v57 = vsub.f32 %v627_v31, %v638_v56 }
 0x13d   : > { %v668_v58 = vmul.f32 1.442695, %v660_v57 }
 0x13f   : > { %1365 = vpow2.f32 %v668_v58 }
 0x141   : > { %v650_v59 = vpop.xlane.xlu0 %649 }
 0x142   : > { %v664_v60 = vsub.f32 %v631_v37, %v650_v59  ;;  %v644_v61 = vpop.xlane.xlu1 %643 }
 0x143   : > { %v662_v63 = vsub.f32 %v629_v34, %v644_v61  ;;  %v469_v34 = vld [vmem:[%s1817_s28 + $0x28] sm:$0xff] }
 0x144   : > { %v676_v62 = vmul.f32 1.442695, %v664_v60  ;;  %914 = vmatpush.msrb.mxu2 %v469_v34 }
 0x145   : > { %v1872_v0 = vpop.eup %1365  ;;  %v672_v2 = vmul.f32 1.442695, %v662_v63 }
 0x146   : > { %1367 = vpow2.f32 %v676_v62  ;;  %v684_v1 = vsel %vm635_vm3, %v1872_v0, 0.0  ;;  %915 = vmatpush.msrb.mxu2 %v468_v36 }
 0x147   : > { %685 = vadd.xlane.f32.xlu1 %v684_v1  ;;  %1369 = vpow2.f32 %v672_v2 }
 0x149   : > { %v656_v3 = vpop.xlane.xlu0 %655  ;;  %v653_v4 = vpop.xlane.xlu2 %652 }
 0x14a   : > { %v666_v5 = vsub.f32 %v633_v43, %v656_v3  ;;  %v665_v8 = vsub.f32 %v632_v47, %v653_v4  ;;  %v647_v11 = vpop.xlane.xlu1 %646 }
 0x14b   : > { %v663_v18 = vsub.f32 %v630_v44, %v647_v11 }
 0x14c   : > { %v1876_v6 = vpop.eup %1367  ;;  %v680_v7 = vmul.f32 1.442695, %v666_v5  ;;  %v678_v10 = vmul.f32 1.442695, %v665_v8 }
 0x14d   : > { %v696_v9 = vsel %vm635_vm3, %v1876_v6, 0.0  ;;  %v1880_v14 = vpop.eup %1369  ;;  %v674_v23 = vmul.f32 1.442695, %v663_v18 }
 0x14e   : > { %1371 = vpow2.f32 %v680_v7  ;;  %697 = vadd.xlane.f32.xlu2 %v696_v9  ;;  %v690_v21 = vsel %vm635_vm3, %v1880_v14, 0.0 }
 0x14f   : > { %1373 = vpow2.f32 %v678_v10 }
 0x151   : > { %v659_v12 = vpop.xlane.xlu2 %658  ;;  %v641_v13 = vpop.xlane.xlu0 %640 }
 0x152   : > { %v667_v15 = vsub.f32 %v634_v53, %v659_v12  ;;  %v661_v16 = vsub.f32 %v628_v52, %v641_v13 }
 0x154   : > { %v1882_v17 = vpop.eup %1371  ;;  %v682_v19 = vmul.f32 1.442695, %v667_v15  ;;  %v670_v20 = vmul.f32 1.442695, %v661_v16 }
 0x155   : > { %v702_v22 = vsel %vm635_vm3, %v1882_v17, 0.0  ;;  %v1888_v24 = vpop.eup %1373 }
 0x156   : > { %1375 = vpow2.f32 %v682_v19  ;;  %691 = vadd.xlane.f32.xlu2 %v690_v21  ;;  %703 = vadd.xlane.f32.xlu0 %v702_v22  ;;  %v699_v28 = vsel %vm635_vm3, %v1888_v24, 0.0 }
 0x157   : > { %1377 = vpow2.f32 %v670_v20 }
 0x158   : > { %1379 = vpow2.f32 %v674_v23 }
 0x15c   : > { %v1890_v25 = vpop.eup %1375 }
 0x15d   : > { %v1892_v26 = vpop.eup %1377  ;;  %v705_v27 = vsel %vm635_vm3, %v1890_v25, 0.0 }
 0x15e   : > { %706 = vadd.xlane.f32.xlu1 %v705_v27  ;;  %700 = vadd.xlane.f32.xlu0 %v699_v28  ;;  %v687_v29 = vsel %vm635_vm3, %v1892_v26, 0.0  ;;  %v1900_v30 = vpop.eup %1379 }
 0x15f   : > { %688 = vadd.xlane.f32.xlu2 %v687_v29  ;;  %v693_v31 = vsel %vm635_vm3, %v1900_v30, 0.0 }
 0x166   : > { %694 = vadd.xlane.f32.xlu0 %v693_v31 }
 0x1ba   : > { %v686_v37 = vpop.xlane.xlu1 %685 }
 0x1bb   : > { %1381 = vrcp.f32 %v686_v37  ;;  %v719_v46 = vand.u32 2147483648, %v686_v37  ;;  %v717_v48 = vand.u32 2147483647, %v686_v37  ;;  %vm713_vm7 = vweird.f32 %v686_v37 }
 0x1bd   : > { %v720_v53 = vor.u32 1.1754944e-38, %v719_v46  ;;  %vm718_vm9 = vcmp.eq.f32.partialorder %v717_v48, 8.507059e+37 }
 0x1c1   : > { %v698_v41 = vpop.xlane.xlu2 %697  ;;  %v1382_v42 = vpop.eup %1381 }
 0x1c2   : > { %1383 = vrcp.f32 %v698_v41  ;;  %v709_v43 = vmul.f32 %v1382_v42, %v686_v37  ;;  %vm714_vm6 = vweird.f32 %v1382_v42  ;;  %v775_v61 = vand.u32 2147483648, %v698_v41 }
 0x1c3   : > { %vm715_vm8 = vmor %vm713_vm7, %vm714_vm6  ;;  %vm769_vm11 = vweird.f32 %v698_v41 }
 0x1c4   : > { %v710_v44 = vsub.f32 1.0, %v709_v43  ;;  %v776_v10 = vor.u32 1.1754944e-38, %v775_v61 }
 0x1c6   : > { %v711_v45 = vmul.f32 %v1382_v42, %v710_v44 }
 0x1c8   : > { %v1384_v47 = vpop.eup %1383  ;;  %v712_v49 = vadd.f32 %v1382_v42, %v711_v45 }
 0x1c9   : > { %v765_v50 = vmul.f32 %v1384_v47, %v698_v41  ;;  %v692_v51 = vpop.xlane.xlu2 %691  ;;  %v1912_v52 = vpop.xlane.xlu0 %703  ;;  %vm770_vm10 = vweird.f32 %v1384_v47 }
 0x1ca   : > { %1385 = vrcp.f32 %v692_v51  ;;  %v716_v55 = vsel %vm715_vm8, %v1382_v42, %v712_v49  ;;  %vm1933_vm12 = vmor %vm769_vm11, %vm770_vm10  ;;  %v745_v8 = vand.u32 2147483647, %v692_v51  ;;  %v747_v9 = vand.u32 2147483648, %v692_v51 }
 0x1cb   : > { %v766_v54 = vsub.f32 1.0, %v765_v50  ;;  %1387 = vrcp.f32 %v1912_v52  ;;  %v721_v57 = vsel %vm718_vm9, %v720_v53, %v716_v55  ;;  %v801_v12 = vand.u32 2147483647, %v1912_v52 }
 0x1cc   : > { %v820_v58 = vmul.f32 %v1872_v0, %v721_v57  ;;  %v773_v0 = vand.u32 2147483647, %v698_v41  ;;  %v803_v16 = vand.u32 2147483648, %v1912_v52  ;;  %vm741_vm15 = vweird.f32 %v692_v51 }
 0x1cd   : > { %v767_v56 = vmul.f32 %v1384_v47, %v766_v54  ;;  %vm797_vm1 = vweird.f32 %v1912_v52  ;;  %vm1945_vm2 = vcmp.eq.f32.partialorder %v745_v8, 8.507059e+37  ;;  %v748_v21 = vor.u32 1.1754944e-38, %v747_v9 }
 0x1ce   : > { %828 = vst.msk [vmem:[%s1917_s24] sm:$0xff] %vm635_vm3, %v820_v58  ;;  %1254 = vmatmul.msk.f32.vlgmr.msrb.gmra.mxu0 %vm635_vm3, %v820_v58  ;;  %vm774_vm14 = vcmp.eq.f32.partialorder %v773_v0, 8.507059e+37  ;;  %vm1955_vm6 = vcmp.eq.f32.partialorder %v801_v12, 8.507059e+37  ;;  %v804_v33 = vor.u32 1.1754944e-38, %v803_v16 }
 0x1cf   : > { %v768_v60 = vadd.f32 %v1384_v47, %v767_v56 }
 0x1d0   : > { %v1386_v59 = vpop.eup %1385 }
 0x1d1   : > { %v1922_v62 = vpop.eup %1387  ;;  %v737_v63 = vmul.f32 %v1386_v59, %v692_v51  ;;  %v1924_v1 = vpop.xlane.xlu1 %706  ;;  %v772_v13 = vsel %vm1933_vm12, %v1384_v47, %v768_v60  ;;  %vm742_vm13 = vweird.f32 %v1386_v59 }
 0x1d2   : > { %v1926_v2 = vpop.xlane.xlu0 %700  ;;  %v793_v3 = vmul.f32 %v1922_v62, %v1912_v52  ;;  %1389 = vrcp.f32 %v1924_v1  ;;  %v1931_v4 = vpop.xlane.xlu2 %688  ;;  %v777_v22 = vsel %vm774_vm14, %v776_v10, %v772_v13  ;;  %vm1949_vm4 = vmor %vm741_vm15, %vm742_vm13  ;;  %vm798_vm5 = vweird.f32 %v1922_v62 }
 0x1d3   : > { %v738_v7 = vsub.f32 1.0, %v737_v63  ;;  %1391 = vrcp.f32 %v1931_v4  ;;  %v824_v31 = vmul.f32 %v1876_v6, %v777_v22  ;;  %vm811_vm7 = vweird.f32 %v1924_v1  ;;  %vm799_vm8 = vmor %vm797_vm1, %vm798_vm5 }
 0x1d4   : > { %v794_v11 = vsub.f32 1.0, %v793_v3  ;;  %1393 = vrcp.f32 %v1926_v2  ;;  %v815_v37 = vand.u32 2147483647, %v1924_v1  ;;  %v817_v38 = vand.u32 2147483648, %v1924_v1 }
 0x1d5   : > { %v739_v15 = vmul.f32 %v1386_v59, %v738_v7  ;;  %832 = vst.msk [vmem:[%s1917_s24 + $0x20] sm:$0xff] %vm635_vm3, %v824_v31  ;;  %1258 = vmatmul.msk.f32.vlgmr.msrb.gmra.mxu2 %vm635_vm3, %v824_v31  ;;  %vm727_vm9 = vweird.f32 %v1931_v4  ;;  %v731_v41 = vand.u32 2147483647, %v1931_v4  ;;  %v733_v48 = vand.u32 2147483648, %v1931_v4 }
 0x1d6   : > { %v795_v18 = vmul.f32 %v1922_v62, %v794_v11  ;;  %vm1991_vm12 = vcmp.eq.f32.partialorder %v815_v37, 8.507059e+37  ;;  %v818_v54 = vor.u32 1.1754944e-38, %v817_v38  ;;  %v789_v55 = vand.u32 2147483648, %v1926_v2 }
 0x1d7   : > { %v740_v19 = vadd.f32 %v1386_v59, %v739_v15  ;;  %vm732_vm1 = vcmp.eq.f32.partialorder %v731_v41, 8.507059e+37  ;;  %v734_v60 = vor.u32 1.1754944e-38, %v733_v48 }
 0x1d8   : > { %v1390_v23 = vpop.eup %1389  ;;  %v796_v28 = vadd.f32 %v1922_v62, %v795_v18  ;;  %v790_v3 = vor.u32 1.1754944e-38, %v789_v55 }
 0x1d9   : > { %v1392_v32 = vpop.eup %1391  ;;  %v807_v34 = vmul.f32 %v1390_v23, %v1924_v1  ;;  %v744_v36 = vsel %vm1949_vm4, %v1386_v59, %v740_v19  ;;  %vm812_vm10 = vweird.f32 %v1390_v23 }
 0x1da   : > { %v1962_v35 = vpop.xlane.xlu0 %694  ;;  %v723_v39 = vmul.f32 %v1392_v32, %v1931_v4  ;;  %v1394_v6 = vpop.eup %1393  ;;  %v749_v42 = vsel %vm1945_vm2, %v748_v21, %v744_v36  ;;  %v800_v46 = vsel %vm799_vm8, %v1922_v62, %v796_v28  ;;  %vm728_vm11 = vweird.f32 %v1392_v32  ;;  %vm1998_vm13 = vmor %vm811_vm7, %vm812_vm10 }
 0x1db   : > { %1395 = vrcp.f32 %v1962_v35  ;;  %v808_v40 = vsub.f32 1.0, %v807_v34  ;;  %v779_v44 = vmul.f32 %v1394_v6, %v1926_v2  ;;  %v822_v45 = vmul.f32 %v1880_v14, %v749_v42  ;;  %vm729_vm15 = vmor %vm727_vm9, %vm728_vm11 }
 0x1dc   : > { %v724_v43 = vsub.f32 1.0, %v723_v39  ;;  %v805_v49 = vsel %vm1955_vm6, %v804_v33, %v800_v46  ;;  %vm784_vm14 = vweird.f32 %v1394_v6  ;;  %vm783_vm2 = vweird.f32 %v1926_v2 }
 0x1dd   : > { %v809_v47 = vmul.f32 %v1390_v23, %v808_v40  ;;  %v780_v51 = vsub.f32 1.0, %v779_v44  ;;  %830 = vst.msk [vmem:[%s1917_s24 + $0x10] sm:$0xff] %vm635_vm3, %v822_v45  ;;  %1256 = vmatmul.msk.f32.vlgmr.msrb.gmra.mxu1 %vm635_vm3, %v822_v45  ;;  %v826_v52 = vmul.f32 %v1882_v17, %v805_v49  ;;  %v787_v17 = vand.u32 2147483647, %v1926_v2  ;;  %vm785_vm4 = vmor %vm783_vm2, %vm784_vm14 }
 0x1de   : > { %v725_v50 = vmul.f32 %v1392_v32, %v724_v43  ;;  %v761_v8 = vand.u32 2147483648, %v1962_v35  ;;  %v759_v11 = vand.u32 2147483647, %v1962_v35  ;;  %vm755_vm7 = vweird.f32 %v1962_v35 }
 0x1df   : > { %v810_v14 = vadd.f32 %v1390_v23, %v809_v47  ;;  %v781_v59 = vmul.f32 %v1394_v6, %v780_v51  ;;  %834 = vst.msk [vmem:[%s1917_s24 + $0x30] sm:$0xff] %vm635_vm3, %v826_v52  ;;  %1260 = vmatmul.msk.f32.vlgmr.msrb.gmra.mxu3 %vm635_vm3, %v826_v52  ;;  %vm788_vm5 = vcmp.eq.f32.partialorder %v787_v17, 8.507059e+37 }
 0x1e0   : > { %v726_v58 = vadd.f32 %v1392_v32, %v725_v50  ;;  %v762_v13 = vor.u32 1.1754944e-38, %v761_v8  ;;  %vm760_vm9 = vcmp.eq.f32.partialorder %v759_v11, 8.507059e+37 }
 0x1e1   : > { %v1396_v56 = vpop.eup %1395  ;;  %v814_v62 = vsel %vm1998_vm13, %v1390_v23, %v810_v14  ;;  %v782_v1 = vadd.f32 %v1394_v6, %v781_v59 }
 0x1e2   : > { %v751_v61 = vmul.f32 %v1396_v56, %v1962_v35  ;;  %v730_v63 = vsel %vm729_vm15, %v1392_v32, %v726_v58  ;;  %v819_v0 = vsel %vm1991_vm12, %v818_v54, %v814_v62  ;;  %vm756_vm6 = vweird.f32 %v1396_v56 }
 0x1e3   : > { %v735_v4 = vsel %vm732_vm1, %v734_v60, %v730_v63  ;;  %v827_v7 = vmul.f32 %v1890_v25, %v819_v0  ;;  %v786_v10 = vsel %vm785_vm4, %v1394_v6, %v782_v1  ;;  %vm757_vm8 = vmor %vm755_vm7, %vm756_vm6 }
 0x1e4   : > { %v752_v5 = vsub.f32 1.0, %v751_v61  ;;  %v821_v9 = vmul.f32 %v1892_v26, %v735_v4  ;;  %v791_v12 = vsel %vm788_vm5, %v790_v3, %v786_v10 }
 0x1e5   : > { %835 = vst.msk [vmem:[%s1917_s24 + $0x38] sm:$0xff] %vm635_vm3, %v827_v7  ;;  %v825_v25 = vmul.f32 %v1888_v24, %v791_v12 }
 0x1e6   : > { %v753_v2 = vmul.f32 %v1396_v56, %v752_v5  ;;  %829 = vst.msk [vmem:[%s1917_s24 + $0x8] sm:$0xff] %vm635_vm3, %v821_v9  ;;  %1255 = vmatmul.msk.f32.gmra.mxu0 %vm635_vm3, %v821_v9 }
 0x1e7   : > { %833 = vst.msk [vmem:[%s1917_s24 + $0x28] sm:$0xff] %vm635_vm3, %v825_v25  ;;  %1259 = vmatmul.msk.f32.gmra.mxu2 %vm635_vm3, %v825_v25  ;;  %1261 = vmatmul.msk.f32.gmra.mxu3 %vm635_vm3, %v827_v7 }
 0x1e8   : > { %v754_v26 = vadd.f32 %v1396_v56, %v753_v2 }
 0x1ea   : > { %v758_v15 = vsel %vm757_vm8, %v1396_v56, %v754_v26 }
 0x1eb   : > { %v763_v16 = vsel %vm760_vm9, %v762_v13, %v758_v15 }
 0x1ec   : > { %v823_v18 = vmul.f32 %v1900_v30, %v763_v16 }
 0x1ee   : > { %831 = vst.msk [vmem:[%s1917_s24 + $0x18] sm:$0xff] %vm635_vm3, %v823_v18  ;;  %1257 = vmatmul.msk.f32.gmra.mxu1 %vm635_vm3, %v823_v18 }
 0x1ef   : > { %1544 = shalt.err (!%p1541_p13)
}
 0x1f0   : > { %s1646_s8 = smov 128   ;;  %s1647_s9 = smov 8  }
 0x1f1   : > { %1285 = dma.vmem_to_hbm [thread:$0]  (%p1733_p9), %s1006_s25, 1024, %s1008_s13, %s966_s1, %s1646_s8, %s1646_s8, %s1647_s9  }
 0x1f2   : > { %s421_s12 = scalar_lea.vmem [#allocation10], %s1799_s0  ;;  %s2150_s14 = sld [smem:[#allocation26_spill]] }
 0x1f3   : > { %s983_s17 = sshll.u32 %s421_s12, 4  ;;  %s961_s27 = scalar_lea.sflag [#allocation4], %s1796_s18  ;;  %s984_s17 = int_to_ptr.vmem [resolvable:$true] %s983_s17 }
 0x1f8   : > { %s982_s0 = scalar_lea.hbm %s2150_s14, %s1274_s30  ;;  %s1565_s25 = scalar_lea.hbm %s2150_s14, 128 }
 0x1f9   : > { %s985_s24 = sshll.u32 %s982_s0, 4  ;;  %s986_s24 = int_to_ptr.hbm [resolvable:$true] %s985_s24 }
 0x1fa   : > { %s1559_s21 = sshra.s32 %s986_s24, 4  ;;  %s1560_s21 = int_to_ptr.hbm [resolvable:$true] %s1559_s21 }
 0x1fb   : > { %s1561_s15 = scalar_lea.hbm %s1560_s21, 64  ;;  %p1566_p3 = scmp.lt.s32.totalorder %s1560_s21, %s2150_s14 }
 0x1fc   : > { %p1562_p0 = scmp.ne.s32.totalorder %s1560_s21, %s1561_s15  ;;  %p1567_p4 = scmp.lt.s32.totalorder %s1565_s25, %s1561_s15 }
 0x1fe   : > { %p1563_p1 = pnand %p1562_p0, %p1733_p9  ;;  %p1568_p5 = por %p1567_p4, %p1566_p3 }
 0x200   : > { %p1564_p2 = pneg %p1563_p1 }
 0x202   : > { %p1569_p6 = pnand %p1568_p5, %p1564_p2 }
 0x24b   : > { %v859_v24 = vpop.f32.mrf.mxu0 }
 0x24c   : > { %952 = vst.msk [vmem:[%s421_s12] sm:$0xff] %vm472_vm0, %v859_v24 }
 0x258   : > { %v917_v19 = vpop.f32.mrf.mxu2 }
 0x259   : > { %956 = vst.msk [vmem:[%s421_s12 + $0x20] sm:$0xff] %vm472_vm0, %v917_v19 }
 0x25a   : > { %v888_v30 = vpop.f32.mrf.mxu1 }
 0x25b   : > { %954 = vst.msk [vmem:[%s421_s12 + $0x10] sm:$0xff] %vm472_vm0, %v888_v30 }
 0x262   : > { %v946_v20 = vpop.f32.mrf.mxu3 }
 0x263   : > { %v862_v21 = vpop.f32.mrf.mxu0  ;;  %958 = vst.msk [vmem:[%s421_s12 + $0x30] sm:$0xff] %vm472_vm0, %v946_v20 }
 0x264   : > { %953 = vst.msk [vmem:[%s421_s12 + $0x8] sm:$0xff] %vm472_vm0, %v862_v21 }
 0x26a   : > { %v920_v23 = vpop.f32.mrf.mxu2  ;;  %v949_v27 = vpop.f32.mrf.mxu3 }
 0x26b   : > { %v891_v22 = vpop.f32.mrf.mxu1  ;;  %957 = vst.msk [vmem:[%s421_s12 + $0x28] sm:$0xff] %vm472_vm0, %v920_v23 }
 0x26c   : > { %955 = vst.msk [vmem:[%s421_s12 + $0x18] sm:$0xff] %vm472_vm0, %v891_v22 }
 0x26d   : > { %959 = vst.msk [vmem:[%s421_s12 + $0x38] sm:$0xff] %vm472_vm0, %v949_v27 }
 0x26e   : > { %1572 = shalt.err (!%p1569_p6)
}
 0x26f   : > { %1284 = dma.vmem_to_hbm [thread:$0]  (%p1733_p9), %s984_s17, 1024, %s986_s24, %s961_s27, %s1646_s8, %s1646_s8, %s1647_s9  }
 0x270 PF: > { %s2151_s18 = sld [smem:[#allocation18_spill]]  ;;  %p1302_p7 = pnand %p1218_p12, %p1740_p11 }
 0x271   : > { %s2153_s7 = sld [smem:[#allocation20_spill]] }
 0x272   : > { %p1303_p8 = pneg %p1302_p7 }
 0x276   : > { %s1022_s11 = sand.u32 1, %s2151_s18  }
 0x277   : > { %s1023_s23 = scalar_lea.sflag [#allocation4], %s1022_s11 }
 0x278   : > { %1610 = dma.done.wait (%p1303_p8), %s1023_s23, 1024  }
 0x279   : > { %1612 = vsyncadd (%p1303_p8), %s1023_s23, 4294966272  ;;  %s1033_s10 = scalar_lea.sflag [#allocation12], %s1022_s11 }
 0x27a   : > { %1614 = dma.done.wait (%p1303_p8), %s1033_s10, 1024  }
 0x27b   : > { %1616 = vsyncadd (%p1303_p8), %s1033_s10, 4294966272  ;;  %s31_s23 = sadd.s32 1, %s2153_s7   ;;  %s2154_s6 = sld [smem:[#allocation19_spill]] }
 0x27c   : > { %p28_p10 = scmp.ge.s32.totalorder %s31_s23, 4   ;;  %s2155_s20 = sld [smem:[#allocation22_spill]] }
 0x27d   : > { %s2156_s4 = sld [smem:[#allocation21_spill]]  ;;  %s2157_s18 = smov %s1623_s19 }
 0x27e   : > { %s2159_s21 = smov %s1635_s22 }
 0x27f   :  { %30 = sbr.rel (!%p28_p10) target bundleno = 16 (0x10), region = 135 }
 0x281   : > { %s2158_s19 = smov %s2154_s6 }
 0x283   : > { %s2160_s22 = smov %s2156_s4 }
 0x284   :  { %1039 = vsyncpa [#allocation3], 1 }
 0x285   :  { %1041 = vsyncpa [#allocation3 + $0x1], 1 }
 0x286   :  { %1042 = vsyncpa [#allocation6], 1 }
 0x287   :  { %1044 = vsyncpa [#allocation6 + $0x1], 1 }
 0x288   :  { %1045 = vsyncpa [#allocation9], 1 }
 0x289   :  { %1047 = vsyncpa [#allocation9 + $0x1], 1 }
 0x28a   :  { %1048 = vsyncpa [#allocation4], 1 }
 0x28b   :  { %1050 = vsyncpa [#allocation4 + $0x1], 1 }
 0x28c   :  { %1051 = vsyncpa [#allocation12], 1 }
 0x28d   :  { %1053 = vsyncpa [#allocation12 + $0x1], 1 }

</bundles_post_ra>
